<compile_context>
chip_gen: v5e
topology: v5e:2x2
jax: 0.10.0
libtpu: 0.0.40
codegen_flags: <defaults>
</compile_context>

<pallas_src>
import jax
import jax.numpy as jnp
from jax.experimental import pallas as pl
from jax.experimental.pallas import tpu as pltpu

_LANES = 128  # one full vreg lane row -> unmasked vst


def _scale_kernel(s_ref, o_ref):
    # s_ref : (3,)     f32 in SMEM -> [scale_lidar, scale_camera, coef]
    # o_ref : (1, 128) f32 in VMEM -> lane 0 = pos_lidar, lane 1 = pos_camera
    lane = jax.lax.broadcasted_iota(jnp.int32, (1, _LANES), dimension=1)
    # Build the lane-dense row in-register: lanes 0/1 carry the two scales,
    # remaining lanes are 0 (sigmoid(0)*coef, discarded by the wrapper slice).
    scales = jnp.where(lane == 0, s_ref[0],
                       jnp.where(lane == 1, s_ref[1], 0.0))
    o_ref[...] = jax.nn.sigmoid(scales) * s_ref[2]


def param_module_forward(lidar_param, camera_param, scale_lidar, scale_camera,
                         coef=0.5):
    """JAX/Pallas equivalent of ParamModule.forward()."""
    # One tiny SMEM input carries both scales and coef (data, not a closure).
    packed = jnp.stack([
        jnp.asarray(scale_lidar, jnp.float32),
        jnp.asarray(scale_camera, jnp.float32),
        jnp.asarray(coef, jnp.float32),
    ])

    scaled = pl.pallas_call(
        _scale_kernel,
        out_shape=jax.ShapeDtypeStruct((1, _LANES), jnp.float32),
        in_specs=[pl.BlockSpec(memory_space=pltpu.MemorySpace.SMEM)],
        out_specs=pl.BlockSpec(memory_space=pltpu.MemorySpace.VMEM),
        cost_estimate=pl.CostEstimate(
            flops=256, transcendentals=128, bytes_accessed=528),
    )(packed)

    # Slice each scalar exactly once; pass-through parameters bypass the
    # kernel entirely (forward returns them unchanged).
    return (jnp.asarray(lidar_param, jnp.float32),
            jnp.asarray(camera_param, jnp.float32),
            scaled[0, 0],
            scaled[0, 1])


if __name__ == "__main__":
    # Module defaults: lidar_param=0.5, camera_param=0.5,
    # scale_lidar=-1.0, scale_camera=-1.0, coef=0.5.  Add a small deterministic
    # perturbation from PRNGKey(0) so the sigmoid path sees non-trivial values.
    key = jax.random.PRNGKey(0)
    noise = jax.random.normal(key, (4,), dtype=jnp.float32) * 0.1
    lidar_param  = jnp.float32(0.5)  + noise[0]
    camera_param = jnp.float32(0.5)  + noise[1]
    scale_lidar  = jnp.float32(-1.0) + noise[2]
    scale_camera = jnp.float32(-1.0) + noise[3]
    coef = 0.5

    fwd = jax.jit(param_module_forward)
    outs = fwd(lidar_param, camera_param, scale_lidar, scale_camera, coef)
    outs = jax.block_until_ready(outs)

    # Pure-JAX reference (mirrors the PyTorch forward exactly).
    ref = (lidar_param,
           camera_param,
           jax.nn.sigmoid(scale_lidar) * coef,
           jax.nn.sigmoid(scale_camera) * coef)

    for got, want in zip(outs, ref):
        assert jnp.allclose(got, want, atol=1e-6, rtol=1e-6), (got, want)

    print("KERNEL_OK")
</pallas_src>

<mosaic_0001>
module attributes {stable_mosaic.version = 11 : i64} {
  func.func @_scale_kernel(%arg0: memref<3xf32, #tpu.memory_space<smem>>, %arg1: memref<1x128xf32, #tpu.memory_space<vmem>>) attributes {dimension_semantics = [], scalar_prefetch = 0 : i64, scratch_operands = 0 : i64, tpu.core_type = #tpu.core_type<tc>} {
    %0 = tpu.iota {dimensions = array<i32: 1>} : vector<1x128xi32>
    %c0_i32 = arith.constant 0 : i32
    %1 = vector.broadcast %c0_i32 : i32 to vector<1x128xi32>
    %2 = arith.cmpi eq, %0, %1 : vector<1x128xi32>
    %c0 = arith.constant 0 : index
    %3 = memref.load %arg0[%c0] : memref<3xf32, #tpu.memory_space<smem>>
    %c1_i32 = arith.constant 1 : i32
    %4 = vector.broadcast %c1_i32 : i32 to vector<1x128xi32>
    %5 = arith.cmpi eq, %0, %4 : vector<1x128xi32>
    %c1 = arith.constant 1 : index
    %6 = memref.load %arg0[%c1] : memref<3xf32, #tpu.memory_space<smem>>
    %cst = arith.constant 0.000000e+00 : f32
    %7 = vector.broadcast %6 : f32 to vector<1x128xf32>
    %8 = vector.broadcast %cst : f32 to vector<1x128xf32>
    %9 = arith.select %5, %7, %8 : vector<1x128xi1>, vector<1x128xf32>
    %10 = vector.broadcast %3 : f32 to vector<1x128xf32>
    %11 = arith.select %2, %10, %9 : vector<1x128xi1>, vector<1x128xf32>
    %12 = arith.negf %11 : vector<1x128xf32>
    %13 = math.exp %12 : vector<1x128xf32>
    %cst_0 = arith.constant 1.000000e+00 : f32
    %14 = vector.broadcast %cst_0 : f32 to vector<1x128xf32>
    %15 = arith.addf %14, %13 : vector<1x128xf32>
    %16 = arith.divf %14, %15 : vector<1x128xf32>
    %c2 = arith.constant 2 : index
    %17 = memref.load %arg0[%c2] : memref<3xf32, #tpu.memory_space<smem>>
    %18 = vector.broadcast %17 : f32 to vector<1x128xf32>
    %19 = arith.mulf %16, %18 : vector<1x128xf32>
    %c0_1 = arith.constant 0 : index
    %c0_2 = arith.constant 0 : index
    %20 = vector.load %arg1[%c0_1, %c0_2] : memref<1x128xf32, #tpu.memory_space<vmem>>, vector<1x128xf32>
    tpu.vector_store %arg1[%c0_1, %c0_2], %19 {strides = array<i32>} : memref<1x128xf32, #tpu.memory_space<vmem>>, vector<1x128xf32>,
    return
  }
}

</mosaic_0001>

<bundles_post_ra>
// kernel: param_module_forward.1
= control target key start
LH: loop header
LB: loop body
LE: loop exit
PB: predicated region body
PF: predicated region fallthrough
CT: control target
= control target key end

     0   :  { %6 = vsyncpa [#allocation3], 0  ;;  %s81_s9 = smov [#allocation2]   ;;  %s98_s0 = inlined_call_operand.vmem [shape: f32[3], index: 0, kind: input, shape index: {}]   ;;  %s99_s1 = inlined_call_operand.vmem [shape: f32[1,128], index: 1, kind: output, shape index: {}]  }
   0x1   :  { %s12_s8 = sshll.u32 %s98_s0, 4  ;;  %s13_s8 = int_to_ptr.vmem [resolvable:$true] %s12_s8 }
   0x2   :  { %15 = dma.vmem_to_smem %s13_s8, 16, %s81_s9, [#allocation3]  }
   0x3   :  { %79 = dma.done.wait [#allocation3], 16  }
   0x4   :  { %80 = vsyncadd [#allocation3], 4294967280 }
   0x5   :  { %20 = sfence }
   0x6   :  { %v21_v0 = vlaneseq  ;;  %s24_s10 = sld [smem:[#allocation2]] }
   0x7   :  { %s59_s11 = sld [smem:[#allocation2 + $0x1]] }
   0x8   :  { %v22_v1 = vand.u32 127, %v21_v0  ;;  %s61_s0 = sld [smem:[#allocation2 + $0x2]] }
   0xa   :  { %vm25_vm0 = vcmp.eq.s32.totalorder %v22_v1, 1  ;;  %vm23_vm1 = vcmp.eq.s32.totalorder %v22_v1, 0 }
   0xc   :  { %v29_v2 = vstv %s24_s10 }
   0xd   :  { %v27_v3 = vstv %s59_s11 }
   0xe   :  { %v28_v4 = vsel %vm25_vm0, %v27_v3, 0.0  ;;  %v51_v17 = vstv %s61_s0 }
   0xf   :  { %v30_v5 = vsel %vm23_vm1, %v29_v2, %v28_v4 }
  0x10   :  { %v60_v6 = vmul.f32 -1.442695, %v30_v5 }
  0x12   :  { %63 = vpow2.f32 %v60_v6 }
  0x18   :  { %v64_v7 = vpop.eup %63 }
  0x19   :  { %v34_v8 = vadd.f32 1.0, %v64_v7 }
  0x1b   :  { %65 = vrcp.f32 %v34_v8  ;;  %v46_v11 = vand.u32 2147483648, %v34_v8  ;;  %vm40_vm2 = vweird.f32 %v34_v8  ;;  %v44_v13 = vand.u32 2147483647, %v34_v8 }
  0x1d   :  { %v47_v15 = vor.u32 1.1754944e-38, %v46_v11  ;;  %vm45_vm5 = vcmp.eq.f32.partialorder %v44_v13, 8.507059e+37 }
  0x21   :  { %v66_v9 = vpop.eup %65 }
  0x22   :  { %v36_v10 = vmul.f32 %v66_v9, %v34_v8  ;;  %vm41_vm3 = vweird.f32 %v66_v9 }
  0x23   :  { %vm42_vm4 = vmor %vm40_vm2, %vm41_vm3 }
  0x24   :  { %v37_v12 = vsub.f32 1.0, %v36_v10 }
  0x26   :  { %v38_v14 = vmul.f32 %v66_v9, %v37_v12 }
  0x28   :  { %v39_v16 = vadd.f32 %v66_v9, %v38_v14 }
  0x2a   :  { %v43_v18 = vsel %vm42_vm4, %v66_v9, %v39_v16 }
  0x2b   :  { %v48_v19 = vsel %vm45_vm5, %v47_v15, %v43_v18 }
  0x2c   :  { %v52_v20 = vmul.f32 %v51_v17, %v48_v19 }
  0x2e   :  { %53 = vst [vmem:[%s99_s1] sm:$0x1] %v52_v20 }
  0x2f   :  { %58 = vsyncpa [#allocation3], 1 }

</bundles_post_ra>
